<compile_context>
chip_gen: v5e
topology: v5e:2x2
jax: 0.10.0
libtpu: 0.0.40
codegen_flags: <defaults>
</compile_context>

<pallas_src>
import functools
from typing import NamedTuple

import jax
import jax.numpy as jnp
from jax.experimental import pallas as pl
from jax.experimental.pallas import tpu as pltpu

_LANE = 128


def _round_up(n: int, m: int) -> int:
    return ((n + m - 1) // m) * m


def _round_down(n: int, m: int) -> int:
    return (n // m) * m


def _tpu_vmem_bytes() -> int:
    """Physical per-TensorCore VMEM; conservative fallback if unqueryable."""
    try:
        return int(pltpu.get_tpu_info().vmem_capacity_bytes)
    except Exception:
        return 64 << 20  # v7x per-TC VMEM (the smallest current generation)


def _mxu_align() -> int:
    """256 for v6e/v7x (256x256 MXU), 128 otherwise (v5e 4x128x128)."""
    try:
        kind = jax.devices()[0].device_kind.lower()
    except Exception:
        return 128
    return 256 if ("v6" in kind or "v7" in kind) else 128


def _pad_feature(dim: int, align: int) -> int:
    # Lane-dense: always a multiple of 128; on 256x256-MXU chips round large
    # dims to 256 to avoid half-filled MXU passes. Tiny dims stay at 128.
    p = _round_up(dim, _LANE)
    if align >= 256 and p > _LANE:
        p = _round_up(dim, 256)
    return p


class PreparedMLP(NamedTuple):
    flat_params: tuple   # (w0, b0, w1, b1, ...) transposed + zero-padded
    layer_dims: tuple    # ((fi_p, fo_p), ...) padded per-layer dims
    input_dim: int
    output_dim: int
    compute_dtype: object


def prepare_mlp_params(weights, biases, *, compute_dtype=None, mxu_align=None):
    """Pad/transpose parameters once (hoisted out of the per-forward path).

    weights[i]: (out_i, in_i) PyTorch Linear layout; biases[i]: (out_i,).
    compute_dtype=jnp.bfloat16 feeds the MXU bf16 operands (f32 accumulation).
    """
    weights = [jnp.asarray(w) for w in weights]
    biases = [jnp.asarray(b) for b in biases]
    if compute_dtype is None:
        compute_dtype = weights[0].dtype
    align = _mxu_align() if mxu_align is None else mxu_align

    flat, dims = [], []
    for w, b in zip(weights, biases):
        fo, fi = w.shape
        fi_p = _pad_feature(fi, align)
        fo_p = _pad_feature(fo, align)
        # Zero padding is mathematically inert (zero weights/bias, ReLU(0)=0).
        w_t = jnp.zeros((fi_p, fo_p), compute_dtype).at[:fi, :fo].set(
            w.astype(compute_dtype).T)
        b_p = jnp.zeros((1, fo_p), compute_dtype).at[0, :fo].set(
            b.astype(compute_dtype))
        flat.extend((w_t, b_p))
        dims.append((fi_p, fo_p))
    return PreparedMLP(tuple(flat), tuple(dims),
                       int(weights[0].shape[1]), int(weights[-1].shape[0]),
                       compute_dtype)


def _mlp_kernel(num_layers, x_ref, *refs):
    """Fused MLP forward on one (bm, in_p) activation tile.

    refs = (w0, b0, ..., w_{L-1}, b_{L-1}, out_ref); weights are (in_p, out_p)
    (already transposed), biases are (1, out_p). ReLU after every layer except
    the last; f32 MXU accumulation with a single bias+ReLU+cast epilogue.
    """
    out_ref = refs[-1]
    params = refs[:-1]

    h = x_ref[...]  # operand dtype straight into the MXU
    for i in range(num_layers):
        w = params[2 * i][...]
        b = params[2 * i + 1][...]
        acc = jnp.dot(h, w, preferred_element_type=jnp.float32)
        acc = acc + b.astype(jnp.float32)
        if i != num_layers - 1:
            h = jnp.maximum(acc, 0.0).astype(w.dtype)
        else:
            h = acc
    out_ref[...] = h.astype(out_ref.dtype)


def mlp_forward(x, prepared: PreparedMLP, *, block_batch=None, out_dtype=None):
    """x: (batch, input_dim). Returns (batch, output_dim) in out_dtype (default x.dtype)."""
    num_layers = len(prepared.layer_dims)
    batch, input_dim = x.shape
    assert input_dim == prepared.input_dim, "input_dim mismatch with prepared params"
    out_dtype = x.dtype if out_dtype is None else out_dtype
    cdtype = prepared.compute_dtype
    act_itemsize = jnp.dtype(cdtype).itemsize

    in_p = prepared.layer_dims[0][0]
    out_p = prepared.layer_dims[-1][1]
    max_feat_p = max(max(d) for d in prepared.layer_dims)

    # --- VMEM budgeting (generation-aware) ---------------------------------
    vmem_cap = _tpu_vmem_bytes()
    vmem_budget = int(0.85 * vmem_cap)  # headroom below physical per-TC VMEM
    param_bytes = sum(int(p.size) * p.dtype.itemsize for p in prepared.flat_params)
    # TODO(synk): if param_bytes exceeds ~60-70% of vmem_budget (huge hidden_dim,
    # esp. on v7x's 64 MiB), switch to streaming K-blocks of each weight from
    # HBM with pltpu.emit_pipeline instead of holding every layer resident.

    # Per-batch-row VMEM: double-buffered input + output activation tiles,
    # plus the f32 intermediates (live h + widest f32 accumulator).
    per_row = (2 * in_p + 2 * out_p) * act_itemsize + 2 * max_feat_p * 4

    if block_batch is None:
        # Larger tiles where VMEM allows (v5e/v6e: 128 MiB), smaller on v7x.
        block_batch = 1024 if vmem_cap >= (100 << 20) else 512

    batch_aligned = _round_up(batch, _LANE)
    bm_vmem = _round_down(max(vmem_budget - param_bytes, 0) // max(per_row, 1), _LANE)
    bm = min(block_batch, batch_aligned, max(bm_vmem, _LANE))
    # Keep >= 2 grid steps when the batch allows it so "parallel" can shard
    # the grid across v7x's two TensorCores.
    if batch_aligned >= 2 * _LANE:
        bm = min(bm, max(_LANE, _round_down(batch_aligned // 2, _LANE)))
    bm = max(_round_down(bm, _LANE), _LANE)
    batch_p = _round_up(batch, bm)

    # Skip the pad/copy when x is already tile-aligned in shape and dtype.
    if batch_p == batch and in_p == input_dim and x.dtype == jnp.dtype(cdtype):
        x_p = x
    else:
        x_p = jnp.zeros((batch_p, in_p), cdtype).at[:batch, :input_dim].set(
            x.astype(cdtype))

    # --- specs --------------------------------------------------------------
    in_specs = [pl.BlockSpec((bm, in_p), lambda i: (i, 0))]
    # Parameters are grid-invariant: pass them as whole arrays in VMEM so they
    # are copied in once and kept single-buffered (no pipeline double-buffer).
    for _ in range(num_layers):
        in_specs.append(pl.BlockSpec(memory_space=pltpu.MemorySpace.VMEM))  # weight
        in_specs.append(pl.BlockSpec(memory_space=pltpu.MemorySpace.VMEM))  # bias

    flops = sum(2 * batch_p * fi_p * fo_p for fi_p, fo_p in prepared.layer_dims)
    io_bytes = (batch_p * in_p * act_itemsize
                + batch_p * out_p * jnp.dtype(out_dtype).itemsize)

    vmem_need = param_bytes + bm * per_row + (8 << 20)
    vmem_limit = int(min(max(vmem_need, 48 << 20), vmem_budget))

    kernel = functools.partial(_mlp_kernel, num_layers)
    out_padded = pl.pallas_call(
        kernel,
        out_shape=jax.ShapeDtypeStruct((batch_p, out_p), out_dtype),
        grid_spec=pltpu.PrefetchScalarGridSpec(
            num_scalar_prefetch=0,
            grid=(batch_p // bm,),
            in_specs=in_specs,
            out_specs=pl.BlockSpec((bm, out_p), lambda i: (i, 0)),
        ),
        compiler_params=pltpu.CompilerParams(
            dimension_semantics=("parallel",),
            vmem_limit_bytes=vmem_limit,
        ),
        cost_estimate=pl.CostEstimate(
            flops=int(flops),
            transcendentals=0,
            bytes_accessed=int(param_bytes + io_bytes),
        ),
    )(x_p, *prepared.flat_params)

    return out_padded[:batch, :prepared.output_dim]


def init_mlp_params(key, input_dim, hidden_dim, output_dim, num_layers,
                    dtype=jnp.float32):
    """Deterministic init matching the PyTorch module's layer shapes.

    Layers: input_proj (hidden, input), (num_layers-1) x (hidden, hidden),
            output_proj (output, hidden).
    """
    layer_shapes = [(input_dim, hidden_dim)]
    for _ in range(num_layers - 1):
        layer_shapes.append((hidden_dim, hidden_dim))
    layer_shapes.append((hidden_dim, output_dim))

    weights, biases = [], []
    for fan_in, fan_out in layer_shapes:
        key, wk, bk = jax.random.split(key, 3)
        bound = 1.0 / jnp.sqrt(fan_in)
        w = jax.random.uniform(wk, (fan_out, fan_in), dtype, -bound, bound)
        b = jax.random.uniform(bk, (fan_out,), dtype, -bound, bound)
        weights.append(w)
        biases.append(b)
    return weights, biases


def mlp_reference(x, weights, biases):
    """Pure-JAX reference matching the PyTorch forward (ReLU activation)."""
    h = x
    n = len(weights)
    for i, (w, b) in enumerate(zip(weights, biases)):
        h = h @ w.T + b
        if i != n - 1:
            h = jnp.maximum(h, 0.0)
    return h


if __name__ == "__main__":
    # MLPConfig(input_dim=16, output_dim=8, hidden_dim=32, num_layers=3)
    # Total Linear layers = num_layers + 1 (input_proj + body + output_proj).
    input_dim, output_dim, hidden_dim, num_layers = 16, 8, 32, 3
    batch = 8

    key = jax.random.PRNGKey(0)
    key, xk = jax.random.split(key)
    x = jax.random.normal(xk, (batch, input_dim), jnp.float32)
    weights, biases = init_mlp_params(key, input_dim, hidden_dim, output_dim, num_layers)

    ref = mlp_reference(x, weights, biases)

    # f32-operand path: must match the reference tightly.
    params_f32 = prepare_mlp_params(weights, biases)
    out = jax.block_until_ready(mlp_forward(x, params_f32))
    assert out.shape == (batch, output_dim)
    assert jnp.allclose(out, ref, atol=1e-4, rtol=1e-4), "f32 mismatch vs reference"

    # bf16 MXU-operand path (f32 accumulation): the high-throughput config.
    params_bf16 = prepare_mlp_params(weights, biases, compute_dtype=jnp.bfloat16)
    out_bf16 = jax.block_until_ready(mlp_forward(x, params_bf16))
    assert out_bf16.shape == (batch, output_dim)
    assert jnp.allclose(out_bf16, ref, atol=1e-1, rtol=1e-1), "bf16 mismatch vs reference"

    print("KERNEL_OK")
</pallas_src>

<mosaic_0001>
module attributes {stable_mosaic.version = 11 : i64} {
  func.func @_mlp_kernel(%arg0: i32, %arg1: memref<128x128xf32, #tpu.memory_space<vmem>>, %arg2: memref<128x128xf32, #tpu.memory_space<vmem>>, %arg3: memref<1x128xf32, #tpu.memory_space<vmem>>, %arg4: memref<128x128xf32, #tpu.memory_space<vmem>>, %arg5: memref<1x128xf32, #tpu.memory_space<vmem>>, %arg6: memref<128x128xf32, #tpu.memory_space<vmem>>, %arg7: memref<1x128xf32, #tpu.memory_space<vmem>>, %arg8: memref<128x128xf32, #tpu.memory_space<vmem>>, %arg9: memref<1x128xf32, #tpu.memory_space<vmem>>, %arg10: memref<128x128xf32, #tpu.memory_space<vmem>>) attributes {dimension_semantics = [#tpu.dimension_semantics<parallel>], iteration_bounds = array<i64: 1>, scalar_prefetch = 0 : i64, scratch_operands = 0 : i64, tpu.core_type = #tpu.core_type<tc>, window_params = [{transform_indices = @transform_0, window_bounds = array<i64: 128, 128>}, {pipeline_mode = #tpu.pipeline_mode<synchronous>, transform_indices = @transform_1, window_bounds = array<i64: 128, 128>}, {pipeline_mode = #tpu.pipeline_mode<synchronous>, transform_indices = @transform_2, window_bounds = array<i64: 1, 128>}, {pipeline_mode = #tpu.pipeline_mode<synchronous>, transform_indices = @transform_3, window_bounds = array<i64: 128, 128>}, {pipeline_mode = #tpu.pipeline_mode<synchronous>, transform_indices = @transform_4, window_bounds = array<i64: 1, 128>}, {pipeline_mode = #tpu.pipeline_mode<synchronous>, transform_indices = @transform_5, window_bounds = array<i64: 128, 128>}, {pipeline_mode = #tpu.pipeline_mode<synchronous>, transform_indices = @transform_6, window_bounds = array<i64: 1, 128>}, {pipeline_mode = #tpu.pipeline_mode<synchronous>, transform_indices = @transform_7, window_bounds = array<i64: 128, 128>}, {pipeline_mode = #tpu.pipeline_mode<synchronous>, transform_indices = @transform_8, window_bounds = array<i64: 1, 128>}, {transform_indices = @transform_9, window_bounds = array<i64: 128, 128>}]} {
    %c0 = arith.constant 0 : index
    %c0_0 = arith.constant 0 : index
    %0 = vector.load %arg1[%c0, %c0_0] : memref<128x128xf32, #tpu.memory_space<vmem>>, vector<128x128xf32>
    %c0_1 = arith.constant 0 : index
    %c0_2 = arith.constant 0 : index
    %1 = vector.load %arg2[%c0_1, %c0_2] : memref<128x128xf32, #tpu.memory_space<vmem>>, vector<128x128xf32>
    %c0_3 = arith.constant 0 : index
    %c0_4 = arith.constant 0 : index
    %2 = vector.load %arg3[%c0_3, %c0_4] : memref<1x128xf32, #tpu.memory_space<vmem>>, vector<1x128xf32>
    %cst = arith.constant dense<0.000000e+00> : vector<128x128xf32>
    %3 = tpu.matmul %0, %1, %cst {dimension_numbers = #tpu.dot_dimension_numbers<[1], [0], [0], [1], [0, 0, 1, 1], [], []>} : vector<128x128xf32>, vector<128x128xf32>, vector<128x128xf32> -> vector<128x128xf32>
    %4 = vector.broadcast %2 : vector<1x128xf32> to vector<128x128xf32>
    %5 = arith.addf %3, %4 : vector<128x128xf32>
    %cst_5 = arith.constant 0.000000e+00 : f32
    %6 = vector.broadcast %cst_5 : f32 to vector<128x128xf32>
    %7 = arith.maximumf %5, %6 : vector<128x128xf32>
    %c0_6 = arith.constant 0 : index
    %c0_7 = arith.constant 0 : index
    %8 = vector.load %arg4[%c0_6, %c0_7] : memref<128x128xf32, #tpu.memory_space<vmem>>, vector<128x128xf32>
    %c0_8 = arith.constant 0 : index
    %c0_9 = arith.constant 0 : index
    %9 = vector.load %arg5[%c0_8, %c0_9] : memref<1x128xf32, #tpu.memory_space<vmem>>, vector<1x128xf32>
    %cst_10 = arith.constant dense<0.000000e+00> : vector<128x128xf32>
    %10 = tpu.matmul %7, %8, %cst_10 {dimension_numbers = #tpu.dot_dimension_numbers<[1], [0], [0], [1], [0, 0, 1, 1], [], []>} : vector<128x128xf32>, vector<128x128xf32>, vector<128x128xf32> -> vector<128x128xf32>
    %11 = vector.broadcast %9 : vector<1x128xf32> to vector<128x128xf32>
    %12 = arith.addf %10, %11 : vector<128x128xf32>
    %cst_11 = arith.constant 0.000000e+00 : f32
    %13 = vector.broadcast %cst_11 : f32 to vector<128x128xf32>
    %14 = arith.maximumf %12, %13 : vector<128x128xf32>
    %c0_12 = arith.constant 0 : index
    %c0_13 = arith.constant 0 : index
    %15 = vector.load %arg6[%c0_12, %c0_13] : memref<128x128xf32, #tpu.memory_space<vmem>>, vector<128x128xf32>
    %c0_14 = arith.constant 0 : index
    %c0_15 = arith.constant 0 : index
    %16 = vector.load %arg7[%c0_14, %c0_15] : memref<1x128xf32, #tpu.memory_space<vmem>>, vector<1x128xf32>
    %cst_16 = arith.constant dense<0.000000e+00> : vector<128x128xf32>
    %17 = tpu.matmul %14, %15, %cst_16 {dimension_numbers = #tpu.dot_dimension_numbers<[1], [0], [0], [1], [0, 0, 1, 1], [], []>} : vector<128x128xf32>, vector<128x128xf32>, vector<128x128xf32> -> vector<128x128xf32>
    %18 = vector.broadcast %16 : vector<1x128xf32> to vector<128x128xf32>
    %19 = arith.addf %17, %18 : vector<128x128xf32>
    %cst_17 = arith.constant 0.000000e+00 : f32
    %20 = vector.broadcast %cst_17 : f32 to vector<128x128xf32>
    %21 = arith.maximumf %19, %20 : vector<128x128xf32>
    %c0_18 = arith.constant 0 : index
    %c0_19 = arith.constant 0 : index
    %22 = vector.load %arg8[%c0_18, %c0_19] : memref<128x128xf32, #tpu.memory_space<vmem>>, vector<128x128xf32>
    %c0_20 = arith.constant 0 : index
    %c0_21 = arith.constant 0 : index
    %23 = vector.load %arg9[%c0_20, %c0_21] : memref<1x128xf32, #tpu.memory_space<vmem>>, vector<1x128xf32>
    %cst_22 = arith.constant dense<0.000000e+00> : vector<128x128xf32>
    %24 = tpu.matmul %21, %22, %cst_22 {dimension_numbers = #tpu.dot_dimension_numbers<[1], [0], [0], [1], [0, 0, 1, 1], [], []>} : vector<128x128xf32>, vector<128x128xf32>, vector<128x128xf32> -> vector<128x128xf32>
    %25 = vector.broadcast %23 : vector<1x128xf32> to vector<128x128xf32>
    %26 = arith.addf %24, %25 : vector<128x128xf32>
    %c0_23 = arith.constant 0 : index
    %c0_24 = arith.constant 0 : index
    %27 = vector.load %arg10[%c0_23, %c0_24] : memref<128x128xf32, #tpu.memory_space<vmem>>, vector<128x128xf32>
    tpu.vector_store %arg10[%c0_23, %c0_24], %26 {strides = array<i32>} : memref<128x128xf32, #tpu.memory_space<vmem>>, vector<128x128xf32>,
    return
  }
  func.func @transform_0(%arg0: i32) -> (i32, i32) {
    %c0_i32 = arith.constant 0 : i32
    %c0_i32_0 = arith.constant 0 : i32
    return %arg0, %c0_i32 : i32, i32
  }
  func.func @transform_1(%arg0: i32) -> (i32, i32) {
    %c0_i32 = arith.constant 0 : i32
    %c0_i32_0 = arith.constant 0 : i32
    %c0_i32_1 = arith.constant 0 : i32
    return %c0_i32, %c0_i32_0 : i32, i32
  }
  func.func @transform_2(%arg0: i32) -> (i32, i32) {
    %c0_i32 = arith.constant 0 : i32
    %c0_i32_0 = arith.constant 0 : i32
    %c0_i32_1 = arith.constant 0 : i32
    return %c0_i32, %c0_i32_0 : i32, i32
  }
  func.func @transform_3(%arg0: i32) -> (i32, i32) {
    %c0_i32 = arith.constant 0 : i32
    %c0_i32_0 = arith.constant 0 : i32
    %c0_i32_1 = arith.constant 0 : i32
    return %c0_i32, %c0_i32_0 : i32, i32
  }
  func.func @transform_4(%arg0: i32) -> (i32, i32) {
    %c0_i32 = arith.constant 0 : i32
    %c0_i32_0 = arith.constant 0 : i32
    %c0_i32_1 = arith.constant 0 : i32
    return %c0_i32, %c0_i32_0 : i32, i32
  }
  func.func @transform_5(%arg0: i32) -> (i32, i32) {
    %c0_i32 = arith.constant 0 : i32
    %c0_i32_0 = arith.constant 0 : i32
    %c0_i32_1 = arith.constant 0 : i32
    return %c0_i32, %c0_i32_0 : i32, i32
  }
  func.func @transform_6(%arg0: i32) -> (i32, i32) {
    %c0_i32 = arith.constant 0 : i32
    %c0_i32_0 = arith.constant 0 : i32
    %c0_i32_1 = arith.constant 0 : i32
    return %c0_i32, %c0_i32_0 : i32, i32
  }
  func.func @transform_7(%arg0: i32) -> (i32, i32) {
    %c0_i32 = arith.constant 0 : i32
    %c0_i32_0 = arith.constant 0 : i32
    %c0_i32_1 = arith.constant 0 : i32
    return %c0_i32, %c0_i32_0 : i32, i32
  }
  func.func @transform_8(%arg0: i32) -> (i32, i32) {
    %c0_i32 = arith.constant 0 : i32
    %c0_i32_0 = arith.constant 0 : i32
    %c0_i32_1 = arith.constant 0 : i32
    return %c0_i32, %c0_i32_0 : i32, i32
  }
  func.func @transform_9(%arg0: i32) -> (i32, i32) {
    %c0_i32 = arith.constant 0 : i32
    %c0_i32_0 = arith.constant 0 : i32
    return %arg0, %c0_i32 : i32, i32
  }
}

</mosaic_0001>

<bundles_post_ra>
// kernel: tpu_custom_call.1
= control target key start
LH: loop header
LB: loop body
LE: loop exit
PB: predicated region body
PF: predicated region fallthrough
CT: control target
= control target key end

     0   :  { %14 = vsyncpa [#allocation3], 0  ;;  %s858_s0 = inlined_call_operand.hbm [shape: f32[128,128], index: 0, kind: input, shape index: {}]   ;;  %s859_s1 = inlined_call_operand.hbm [shape: f32[128,128], index: 1, kind: input, shape index: {}]   ;;  %s860_s2 = inlined_call_operand.vmem [shape: f32[1,128], index: 2, kind: input, shape index: {}]   ;;  %s861_s3 = inlined_call_operand.hbm [shape: f32[128,128], index: 3, kind: input, shape index: {}]   ;;  %s862_s4 = inlined_call_operand.vmem [shape: f32[1,128], index: 4, kind: input, shape index: {}]   ;;  %s863_s5 = inlined_call_operand.hbm [shape: f32[128,128], index: 5, kind: input, shape index: {}]   ;;  %s864_s6 = inlined_call_operand.vmem [shape: f32[1,128], index: 6, kind: input, shape index: {}]   ;;  %s865_s7 = inlined_call_operand.hbm [shape: f32[128,128], index: 7, kind: input, shape index: {}]   ;;  %s866_s8 = inlined_call_operand.vmem [shape: f32[1,128], index: 8, kind: input, shape index: {}]   ;;  %s867_s9 = inlined_call_operand.hbm [shape: f32[128,128], index: 9, kind: output, shape index: {}]  }
   0x1   :  { %15 = vsyncpa [#allocation6], 0 }
   0x2   :  { %16 = vsyncpa [#allocation9], 0 }
   0x3   :  { %17 = vsyncpa [#allocation4], 0  ;;  %s35_s11 = sshll.u32 %s859_s1, 4  ;;  %s716_s12 = smov [#allocation5]   ;;  %s36_s11 = int_to_ptr.hbm [resolvable:$true] %s35_s11 }
   0x4   :  { %s37_s13 = sshll.u32 %s716_s12, 4  ;;  %s65_s16 = sshll.u32 %s863_s5, 4  ;;  %s38_s13 = int_to_ptr.vmem [resolvable:$true] %s37_s13  ;;  %s66_s16 = int_to_ptr.hbm [resolvable:$true] %s65_s16 }
   0x5   :  { %s717_s17 = smov 128   ;;  %s718_s18 = smov 8  }
   0x6   :  { %43 = dma.hbm_to_vmem [thread:$0]  %s36_s11, 2048, %s38_s13, [#allocation6], %s717_s17, %s717_s17, %s718_s18  }
   0x7   :  { %s719_s19 = smov [#allocation8]   ;;  %s22_s1 = sshll.u32 %s858_s0, 4  ;;  %s23_s1 = int_to_ptr.hbm [resolvable:$true] %s22_s1 }
   0x8   :  { %s67_s20 = sshll.u32 %s719_s19, 4  ;;  %s50_s24 = sshll.u32 %s861_s3, 4  ;;  %s68_s20 = int_to_ptr.vmem [resolvable:$true] %s67_s20  ;;  %s51_s24 = int_to_ptr.hbm [resolvable:$true] %s50_s24 }
   0x9   :  { %73 = dma.hbm_to_vmem [thread:$0]  %s66_s16, 2048, %s68_s20, [#allocation9], %s717_s17, %s717_s17, %s718_s18  }
   0xa   :  { %s720_s25 = smov [#allocation2]   ;;  %s721_s27 = smov [#allocation7]  }
   0xb   :  { %s24_s26 = sshll.u32 %s720_s25, 4  ;;  %s52_s0 = sshll.u32 %s721_s27, 4  ;;  %s25_s26 = int_to_ptr.vmem [resolvable:$true] %s24_s26  ;;  %s53_s0 = int_to_ptr.vmem [resolvable:$true] %s52_s0 }
   0xc   :  { %30 = dma.hbm_to_vmem [thread:$0]  %s23_s1, 2048, %s25_s26, [#allocation3], %s717_s17, %s717_s17, %s718_s18  }
   0xd   :  { %s80_s30 = sshll.u32 %s865_s7, 4  ;;  %s722_s3 = smov [#allocation10]   ;;  %s81_s30 = int_to_ptr.hbm [resolvable:$true] %s80_s30 }
   0xe   :  { %58 = dma.hbm_to_vmem [thread:$0]  %s51_s24, 2048, %s53_s0, [#allocation6], %s717_s17, %s717_s17, %s718_s18  }
   0xf   :  { %s82_s10 = sshll.u32 %s722_s3, 4  ;;  %s83_s10 = int_to_ptr.vmem [resolvable:$true] %s82_s10 }
  0x10   :  { %88 = dma.hbm_to_vmem [thread:$0]  %s81_s30, 2048, %s83_s10, [#allocation9], %s717_s17, %s717_s17, %s718_s18  }
  0x11   :  { %708 = dma.done.wait [#allocation3], 2048  }
  0x12   :  { %709 = vsyncadd [#allocation3], 4294965248 }
  0x13   :  { %710 = dma.done.wait [#allocation6], 4096  }
  0x14   :  { %711 = vsyncadd [#allocation6], 4294963200 }
  0x15   :  { %712 = dma.done.wait [#allocation9], 4096  }
  0x16   :  { %713 = vsyncadd [#allocation9], 4294963200  ;;  %v142_v0 = vld [vmem:[#allocation5 + $0x78] sm:$0xff]  ;;  %v141_v1 = vld [vmem:[#allocation5 + $0x70] sm:$0xff]  ;;  %s537_s20 = sshll.u32 %s867_s9, 4  ;;  %s538_s20 = int_to_ptr.hbm [resolvable:$true] %s537_s20 }
  0x17   :  { %147 = vmatpush.msra.mxu0 %v142_v0  ;;  %v140_v2 = vld [vmem:[#allocation5 + $0x68] sm:$0xff]  ;;  %v139_v3 = vld [vmem:[#allocation5 + $0x60] sm:$0xff]  ;;  %v138_v4 = vld [vmem:[#allocation5 + $0x58] sm:$0xff] }
  0x18   :  { %v137_v5 = vld [vmem:[#allocation5 + $0x50] sm:$0xff]  ;;  %v136_v6 = vld [vmem:[#allocation5 + $0x48] sm:$0xff]  ;;  %v135_v7 = vld [vmem:[#allocation5 + $0x40] sm:$0xff] }
  0x19   :  { %148 = vmatpush.msra.mxu0 %v141_v1  ;;  %v134_v8 = vld [vmem:[#allocation5 + $0x38] sm:$0xff]  ;;  %v133_v9 = vld [vmem:[#allocation5 + $0x30] sm:$0xff]  ;;  %v132_v10 = vld [vmem:[#allocation5 + $0x28] sm:$0xff] }
  0x1a   :  { %v131_v11 = vld [vmem:[#allocation5 + $0x20] sm:$0xff]  ;;  %v130_v12 = vld [vmem:[#allocation5 + $0x18] sm:$0xff]  ;;  %v129_v13 = vld [vmem:[#allocation5 + $0x10] sm:$0xff] }
  0x1b   :  { %149 = vmatpush.msra.mxu0 %v140_v2  ;;  %v128_v14 = vld [vmem:[#allocation5 + $0x8] sm:$0xff]  ;;  %v127_v15 = vld [vmem:[#allocation5] sm:$0xff]  ;;  %v113_v18 = vld [vmem:[#allocation2 + $0x10] sm:$0xff] }
  0x1c   :  { %v111_v16 = vld [vmem:[#allocation2] sm:$0xff]  ;;  %v112_v17 = vld [vmem:[#allocation2 + $0x8] sm:$0xff]  ;;  %v114_v19 = vld [vmem:[#allocation2 + $0x18] sm:$0xff] }
  0x1d   :  { %150 = vmatpush.msra.mxu0 %v139_v3  ;;  %v115_v20 = vld [vmem:[#allocation2 + $0x20] sm:$0xff]  ;;  %v116_v21 = vld [vmem:[#allocation2 + $0x28] sm:$0xff]  ;;  %v117_v22 = vld [vmem:[#allocation2 + $0x30] sm:$0xff] }
  0x1e   :  { %v118_v23 = vld [vmem:[#allocation2 + $0x38] sm:$0xff]  ;;  %v119_v24 = vld [vmem:[#allocation2 + $0x40] sm:$0xff]  ;;  %v242_v26 = vld [vmem:[#allocation7 + $0x70] sm:$0xff] }
  0x1f   :  { %151 = vmatpush.msra.mxu0 %v138_v4  ;;  %v243_v25 = vld [vmem:[#allocation7 + $0x78] sm:$0xff]  ;;  %v241_v27 = vld [vmem:[#allocation7 + $0x68] sm:$0xff]  ;;  %v240_v29 = vld [vmem:[#allocation7 + $0x60] sm:$0xff] }
  0x20   :  { %248 = vmatpush.msra.mxu1 %v243_v25  ;;  %v120_v28 = vld [vmem:[#allocation2 + $0x48] sm:$0xff]  ;;  %v239_v30 = vld [vmem:[#allocation7 + $0x58] sm:$0xff]  ;;  %v238_v31 = vld [vmem:[#allocation7 + $0x50] sm:$0xff] }
  0x21   :  { %152 = vmatpush.msra.mxu0 %v137_v5  ;;  %v237_v32 = vld [vmem:[#allocation7 + $0x48] sm:$0xff]  ;;  %v121_v33 = vld [vmem:[#allocation2 + $0x50] sm:$0xff]  ;;  %v236_v34 = vld [vmem:[#allocation7 + $0x40] sm:$0xff] }
  0x22   :  { %249 = vmatpush.msra.mxu1 %v242_v26  ;;  %v235_v35 = vld [vmem:[#allocation7 + $0x38] sm:$0xff]  ;;  %v234_v36 = vld [vmem:[#allocation7 + $0x30] sm:$0xff]  ;;  %v233_v37 = vld [vmem:[#allocation7 + $0x28] sm:$0xff] }
  0x23   :  { %153 = vmatpush.msra.mxu0 %v136_v6  ;;  %v122_v38 = vld [vmem:[#allocation2 + $0x58] sm:$0xff]  ;;  %v232_v39 = vld [vmem:[#allocation7 + $0x20] sm:$0xff]  ;;  %v230_v41 = vld [vmem:[#allocation7 + $0x10] sm:$0xff] }
  0x24   :  { %250 = vmatpush.msra.mxu1 %v241_v27  ;;  %v231_v40 = vld [vmem:[#allocation7 + $0x18] sm:$0xff]  ;;  %v123_v42 = vld [vmem:[#allocation2 + $0x60] sm:$0xff]  ;;  %v229_v43 = vld [vmem:[#allocation7 + $0x8] sm:$0xff] }
  0x25   :  { %154 = vmatpush.msra.mxu0 %v135_v7  ;;  %v228_v44 = vld [vmem:[#allocation7] sm:$0xff]  ;;  %v124_v45 = vld [vmem:[#allocation2 + $0x68] sm:$0xff]  ;;  %v125_v46 = vld [vmem:[#allocation2 + $0x70] sm:$0xff] }
  0x26   :  { %251 = vmatpush.msra.mxu1 %v240_v29  ;;  %v126_v47 = vld [vmem:[#allocation2 + $0x78] sm:$0xff]  ;;  %v807_v48 = vld [vmem:[%s860_s2] ss:$0 sm:$0xff]  ;;  %v335_v29 = vld [vmem:[#allocation8 + $0x30] sm:$0xff] }
  0x27   :  { %155 = vmatpush.msra.mxu0 %v134_v8  ;;  %v337_v25 = vld [vmem:[#allocation8 + $0x40] sm:$0xff]  ;;  %v336_v26 = vld [vmem:[#allocation8 + $0x38] sm:$0xff] }
  0x28   :  { %252 = vmatpush.msra.mxu1 %v239_v30 }
  0x29   :  { %156 = vmatpush.msra.mxu0 %v133_v9 }
  0x2a   :  { %253 = vmatpush.msra.mxu1 %v238_v31  ;;  %v334_v31 = vld [vmem:[#allocation8 + $0x28] sm:$0xff] }
  0x2b   :  { %157 = vmatpush.msra.mxu0 %v132_v10 }
  0x2c   :  { %254 = vmatpush.msra.mxu1 %v237_v32  ;;  %v333_v32 = vld [vmem:[#allocation8 + $0x20] sm:$0xff] }
  0x2d   :  { %158 = vmatpush.msra.mxu0 %v131_v11 }
  0x2e   :  { %255 = vmatpush.msra.mxu1 %v236_v34 }
  0x2f   :  { %159 = vmatpush.msra.mxu0 %v130_v12  ;;  %v344_v12 = vld [vmem:[#allocation8 + $0x78] sm:$0xff] }
  0x30   :  { %256 = vmatpush.msra.mxu1 %v235_v35  ;;  %349 = vmatpush.msra.mxu2 %v344_v12 }
  0x31   :  { %160 = vmatpush.msra.mxu0 %v129_v13 }
  0x32   :  { %257 = vmatpush.msra.mxu1 %v234_v36  ;;  %v331_v36 = vld [vmem:[#allocation8 + $0x10] sm:$0xff] }
  0x33   :  { %161 = vmatpush.msra.mxu0 %v128_v14 }
  0x34   :  { %258 = vmatpush.msra.mxu1 %v233_v37 }
  0x35   :  { %162 = vmatpush.msra.mxu0 %v127_v15  ;;  %v343_v15 = vld [vmem:[#allocation8 + $0x70] sm:$0xff] }
  0x36   :  { %163 = vmatmul.f32.vlgmr.msra.gmra.mxu0 %v111_v16  ;;  %259 = vmatpush.msra.mxu1 %v232_v39  ;;  %v329_v39 = vld [vmem:[#allocation8] sm:$0xff] }
  0x37   :  { %350 = vmatpush.msra.mxu2 %v343_v15 }
  0x38   :  { %260 = vmatpush.msra.mxu1 %v231_v40 }
  0x3a   :  { %261 = vmatpush.msra.mxu1 %v230_v41 }
  0x3c   :  { %262 = vmatpush.msra.mxu1 %v229_v43 }
  0x3e   :  { %166 = vmatmul.f32.gmra.mxu0 %v112_v17  ;;  %263 = vmatpush.msra.mxu1 %v228_v44  ;;  %v342_v17 = vld [vmem:[#allocation8 + $0x68] sm:$0xff] }
  0x3f   :  { %351 = vmatpush.msra.mxu2 %v342_v17  ;;  %v444_v17 = vld [vmem:[#allocation10 + $0x70] sm:$0xff] }
  0x46   :  { %169 = vmatmul.f32.gmra.mxu0 %v113_v18  ;;  %v341_v18 = vld [vmem:[#allocation8 + $0x60] sm:$0xff] }
  0x47   :  { %352 = vmatpush.msra.mxu2 %v341_v18 }
  0x4e   :  { %172 = vmatmul.f32.gmra.mxu0 %v114_v19  ;;  %v340_v19 = vld [vmem:[#allocation8 + $0x58] sm:$0xff] }
  0x4f   :  { %353 = vmatpush.msra.mxu2 %v340_v19 }
  0x56   :  { %175 = vmatmul.f32.gmra.mxu0 %v115_v20 }
  0x5e   :  { %178 = vmatmul.f32.gmra.mxu0 %v116_v21 }
  0x66   :  { %181 = vmatmul.f32.gmra.mxu0 %v117_v22  ;;  %v339_v22 = vld [vmem:[#allocation8 + $0x50] sm:$0xff] }
  0x67   :  { %354 = vmatpush.msra.mxu2 %v339_v22  ;;  %v442_v22 = vld [vmem:[#allocation10 + $0x60] sm:$0xff] }
  0x6e   :  { %184 = vmatmul.f32.gmra.mxu0 %v118_v23 }
  0x76   :  { %187 = vmatmul.f32.gmra.mxu0 %v119_v24  ;;  %v338_v24 = vld [vmem:[#allocation8 + $0x48] sm:$0xff] }
  0x77   :  { %355 = vmatpush.msra.mxu2 %v338_v24  ;;  %v440_v24 = vld [vmem:[#allocation10 + $0x50] sm:$0xff] }
  0x79   :  { %356 = vmatpush.msra.mxu2 %v337_v25 }
  0x7b   :  { %357 = vmatpush.msra.mxu2 %v336_v26 }
  0x7d   :  { %358 = vmatpush.msra.mxu2 %v335_v29  ;;  %v438_v29 = vld [vmem:[#allocation10 + $0x40] sm:$0xff] }
  0x7e   :  { %190 = vmatmul.f32.gmra.mxu0 %v120_v28 }
  0x7f   :  { %359 = vmatpush.msra.mxu2 %v334_v31  ;;  %v436_v31 = vld [vmem:[#allocation10 + $0x30] sm:$0xff] }
  0x81   :  { %360 = vmatpush.msra.mxu2 %v333_v32  ;;  %v435_v32 = vld [vmem:[#allocation10 + $0x28] sm:$0xff] }
  0x86   :  { %193 = vmatmul.f32.gmra.mxu0 %v121_v33  ;;  %v332_v33 = vld [vmem:[#allocation8 + $0x18] sm:$0xff] }
  0x87   :  { %361 = vmatpush.msra.mxu2 %v332_v33 }
  0x89   :  { %362 = vmatpush.msra.mxu2 %v331_v36 }
  0x8e   :  { %196 = vmatmul.f32.gmra.mxu0 %v122_v38  ;;  %v330_v38 = vld [vmem:[#allocation8 + $0x8] sm:$0xff] }
  0x8f   :  { %363 = vmatpush.msra.mxu2 %v330_v38  ;;  %v432_v38 = vld [vmem:[#allocation10 + $0x10] sm:$0xff] }
  0x91   :  { %364 = vmatpush.msra.mxu2 %v329_v39 }
  0x96   :  { %199 = vmatmul.f32.gmra.mxu0 %v123_v42 }
  0x9e   :  { %202 = vmatmul.f32.gmra.mxu0 %v124_v45 }
  0xa6   :  { %205 = vmatmul.f32.gmra.mxu0 %v125_v46 }
  0xae   :  { %208 = vmatmul.f32.gmra.mxu0 %v126_v47 }
  0xb3   :  { %v164_v49 = vpop.f32.mrf.mxu0 }
  0xb4   :  { %v165_v50 = vadd.f32 %v807_v48, %v164_v49 }
  0xb6   :  { %v212_v51 = vmax.f32 %v165_v50, 0.0  ;;  %v828_v50 = vld [vmem:[%s862_s4] ss:$0 sm:$0xff] }
  0xb8   :  { %264 = vmatmul.f32.vlgmr.msra.gmra.mxu1 %v212_v51 }
  0xbb   :  { %v167_v52 = vpop.f32.mrf.mxu0 }
  0xbc   :  { %v168_v53 = vadd.f32 %v807_v48, %v167_v52 }
  0xbe   :  { %v213_v54 = vmax.f32 %v168_v53, 0.0 }
  0xc0   :  { %267 = vmatmul.f32.gmra.mxu1 %v213_v54 }
  0xc3   :  { %v170_v55 = vpop.f32.mrf.mxu0 }
  0xc4   :  { %v171_v56 = vadd.f32 %v807_v48, %v170_v55 }
  0xc6   :  { %v214_v57 = vmax.f32 %v171_v56, 0.0 }
  0xc8   :  { %270 = vmatmul.f32.gmra.mxu1 %v214_v57 }
  0xcb   :  { %v173_v58 = vpop.f32.mrf.mxu0 }
  0xcc   :  { %v174_v59 = vadd.f32 %v807_v48, %v173_v58 }
  0xce   :  { %v215_v60 = vmax.f32 %v174_v59, 0.0 }
  0xd0   :  { %273 = vmatmul.f32.gmra.mxu1 %v215_v60 }
  0xd3   :  { %v176_v61 = vpop.f32.mrf.mxu0 }
  0xd4   :  { %v177_v62 = vadd.f32 %v807_v48, %v176_v61 }
  0xd6   :  { %v216_v63 = vmax.f32 %v177_v62, 0.0 }
  0xd8   :  { %276 = vmatmul.f32.gmra.mxu1 %v216_v63 }
  0xdb   :  { %v179_v0 = vpop.f32.mrf.mxu0 }
  0xdc   :  { %v180_v1 = vadd.f32 %v807_v48, %v179_v0 }
  0xde   :  { %v217_v2 = vmax.f32 %v180_v1, 0.0 }
  0xe0   :  { %279 = vmatmul.f32.gmra.mxu1 %v217_v2 }
  0xe3   :  { %v182_v3 = vpop.f32.mrf.mxu0 }
  0xe4   :  { %v183_v4 = vadd.f32 %v807_v48, %v182_v3 }
  0xe6   :  { %v218_v5 = vmax.f32 %v183_v4, 0.0 }
  0xe8   :  { %282 = vmatmul.f32.gmra.mxu1 %v218_v5 }
  0xeb   :  { %v185_v6 = vpop.f32.mrf.mxu0 }
  0xec   :  { %v186_v7 = vadd.f32 %v807_v48, %v185_v6 }
  0xee   :  { %v219_v8 = vmax.f32 %v186_v7, 0.0 }
  0xf0   :  { %285 = vmatmul.f32.gmra.mxu1 %v219_v8 }
  0xf3   :  { %v188_v9 = vpop.f32.mrf.mxu0 }
  0xf4   :  { %v189_v10 = vadd.f32 %v807_v48, %v188_v9 }
  0xf6   :  { %v220_v11 = vmax.f32 %v189_v10, 0.0 }
  0xf8   :  { %288 = vmatmul.f32.gmra.mxu1 %v220_v11 }
  0xfb   :  { %v191_v13 = vpop.f32.mrf.mxu0 }
  0xfc   :  { %v192_v14 = vadd.f32 %v807_v48, %v191_v13 }
  0xfe   :  { %v221_v16 = vmax.f32 %v192_v14, 0.0 }
 0x100   :  { %291 = vmatmul.f32.gmra.mxu1 %v221_v16  ;;  %v445_v16 = vld [vmem:[#allocation10 + $0x78] sm:$0xff] }
 0x101   :  { %450 = vmatpush.msra.mxu3 %v445_v16 }
 0x103   :  { %v194_v20 = vpop.f32.mrf.mxu0  ;;  %451 = vmatpush.msra.mxu3 %v444_v17 }
 0x104   :  { %v195_v21 = vadd.f32 %v807_v48, %v194_v20  ;;  %v443_v20 = vld [vmem:[#allocation10 + $0x68] sm:$0xff] }
 0x105   :  { %452 = vmatpush.msra.mxu3 %v443_v20 }
 0x106   :  { %v222_v23 = vmax.f32 %v195_v21, 0.0 }
 0x107   :  { %453 = vmatpush.msra.mxu3 %v442_v22 }
 0x108   :  { %294 = vmatmul.f32.gmra.mxu1 %v222_v23  ;;  %v441_v23 = vld [vmem:[#allocation10 + $0x58] sm:$0xff] }
 0x109   :  { %454 = vmatpush.msra.mxu3 %v441_v23 }
 0x10b   :  { %v197_v27 = vpop.f32.mrf.mxu0  ;;  %455 = vmatpush.msra.mxu3 %v440_v24 }
 0x10c   :  { %v198_v28 = vadd.f32 %v807_v48, %v197_v27  ;;  %v439_v27 = vld [vmem:[#allocation10 + $0x48] sm:$0xff] }
 0x10d   :  { %456 = vmatpush.msra.mxu3 %v439_v27 }
 0x10e   :  { %v223_v30 = vmax.f32 %v198_v28, 0.0 }
 0x10f   :  { %457 = vmatpush.msra.mxu3 %v438_v29 }
 0x110   :  { %297 = vmatmul.f32.gmra.mxu1 %v223_v30  ;;  %v437_v30 = vld [vmem:[#allocation10 + $0x38] sm:$0xff] }
 0x111   :  { %458 = vmatpush.msra.mxu3 %v437_v30 }
 0x113   :  { %v200_v34 = vpop.f32.mrf.mxu0  ;;  %459 = vmatpush.msra.mxu3 %v436_v31 }
 0x114   :  { %v201_v35 = vadd.f32 %v807_v48, %v200_v34 }
 0x115   :  { %460 = vmatpush.msra.mxu3 %v435_v32 }
 0x116   :  { %v224_v37 = vmax.f32 %v201_v35, 0.0  ;;  %v434_v35 = vld [vmem:[#allocation10 + $0x20] sm:$0xff] }
 0x117   :  { %461 = vmatpush.msra.mxu3 %v434_v35  ;;  %v563_v35 = vld [vmem:[%s866_s8] ss:$0 sm:$0xff]  ;;  %s723_s8 = smov [#allocation11]  }
 0x118   :  { %300 = vmatmul.f32.gmra.mxu1 %v224_v37  ;;  %v433_v37 = vld [vmem:[#allocation10 + $0x18] sm:$0xff]  ;;  %s535_s15 = sshll.u32 %s723_s8, 4  ;;  %s536_s15 = int_to_ptr.vmem [resolvable:$true] %s535_s15 }
 0x119   :  { %462 = vmatpush.msra.mxu3 %v433_v37 }
 0x11b   :  { %v203_v40 = vpop.f32.mrf.mxu0  ;;  %463 = vmatpush.msra.mxu3 %v432_v38 }
 0x11c   :  { %v204_v41 = vadd.f32 %v807_v48, %v203_v40 }
 0x11e   :  { %v225_v42 = vmax.f32 %v204_v41, 0.0  ;;  %v431_v41 = vld [vmem:[#allocation10 + $0x8] sm:$0xff] }
 0x11f   :  { %464 = vmatpush.msra.mxu3 %v431_v41 }
 0x120   :  { %303 = vmatmul.f32.gmra.mxu1 %v225_v42 }
 0x123   :  { %v206_v43 = vpop.f32.mrf.mxu0 }
 0x124   :  { %v207_v44 = vadd.f32 %v807_v48, %v206_v43  ;;  %v430_v43 = vld [vmem:[#allocation10] sm:$0xff] }
 0x125   :  { %465 = vmatpush.msra.mxu3 %v430_v43 }
 0x126   :  { %v226_v45 = vmax.f32 %v207_v44, 0.0 }
 0x128   :  { %306 = vmatmul.f32.gmra.mxu1 %v226_v45 }
 0x12b   :  { %v209_v46 = vpop.f32.mrf.mxu0 }
 0x12c   :  { %v210_v47 = vadd.f32 %v807_v48, %v209_v46 }
 0x12e   :  { %v227_v49 = vmax.f32 %v210_v47, 0.0 }
 0x130   :  { %309 = vmatmul.f32.gmra.mxu1 %v227_v49 }
 0x135   :  { %v265_v51 = vpop.f32.mrf.mxu1 }
 0x136   :  { %v266_v52 = vadd.f32 %v828_v50, %v265_v51 }
 0x138   :  { %v313_v53 = vmax.f32 %v266_v52, 0.0  ;;  %v562_v52 = vld [vmem:[%s864_s6] ss:$0 sm:$0xff] }
 0x13a   :  { %365 = vmatmul.f32.vlgmr.msra.gmra.mxu2 %v313_v53 }
 0x13d   :  { %v268_v54 = vpop.f32.mrf.mxu1 }
 0x13e   :  { %v269_v55 = vadd.f32 %v828_v50, %v268_v54 }
 0x140   :  { %v314_v56 = vmax.f32 %v269_v55, 0.0 }
 0x142   :  { %368 = vmatmul.f32.gmra.mxu2 %v314_v56 }
 0x145   :  { %v271_v57 = vpop.f32.mrf.mxu1 }
 0x146   :  { %v272_v48 = vadd.f32 %v828_v50, %v271_v57 }
 0x148   :  { %v315_v58 = vmax.f32 %v272_v48, 0.0 }
 0x14a   :  { %371 = vmatmul.f32.gmra.mxu2 %v315_v58 }
 0x14d   :  { %v274_v59 = vpop.f32.mrf.mxu1 }
 0x14e   :  { %v275_v60 = vadd.f32 %v828_v50, %v274_v59 }
 0x150   :  { %v316_v61 = vmax.f32 %v275_v60, 0.0 }
 0x152   :  { %374 = vmatmul.f32.gmra.mxu2 %v316_v61 }
 0x155   :  { %v277_v62 = vpop.f32.mrf.mxu1 }
 0x156   :  { %v278_v63 = vadd.f32 %v828_v50, %v277_v62 }
 0x158   :  { %v317_v0 = vmax.f32 %v278_v63, 0.0 }
 0x15a   :  { %377 = vmatmul.f32.gmra.mxu2 %v317_v0 }
 0x15d   :  { %v280_v1 = vpop.f32.mrf.mxu1 }
 0x15e   :  { %v281_v2 = vadd.f32 %v828_v50, %v280_v1 }
 0x160   :  { %v318_v3 = vmax.f32 %v281_v2, 0.0 }
 0x162   :  { %380 = vmatmul.f32.gmra.mxu2 %v318_v3 }
 0x165   :  { %v283_v4 = vpop.f32.mrf.mxu1 }
 0x166   :  { %v284_v5 = vadd.f32 %v828_v50, %v283_v4 }
 0x168   :  { %v319_v6 = vmax.f32 %v284_v5, 0.0 }
 0x16a   :  { %383 = vmatmul.f32.gmra.mxu2 %v319_v6 }
 0x16d   :  { %v286_v7 = vpop.f32.mrf.mxu1 }
 0x16e   :  { %v287_v8 = vadd.f32 %v828_v50, %v286_v7 }
 0x170   :  { %v320_v9 = vmax.f32 %v287_v8, 0.0 }
 0x172   :  { %386 = vmatmul.f32.gmra.mxu2 %v320_v9 }
 0x175   :  { %v289_v10 = vpop.f32.mrf.mxu1 }
 0x176   :  { %v290_v11 = vadd.f32 %v828_v50, %v289_v10 }
 0x178   :  { %v321_v12 = vmax.f32 %v290_v11, 0.0 }
 0x17a   :  { %389 = vmatmul.f32.gmra.mxu2 %v321_v12 }
 0x17d   :  { %v292_v13 = vpop.f32.mrf.mxu1 }
 0x17e   :  { %v293_v14 = vadd.f32 %v828_v50, %v292_v13 }
 0x180   :  { %v322_v15 = vmax.f32 %v293_v14, 0.0 }
 0x182   :  { %392 = vmatmul.f32.gmra.mxu2 %v322_v15 }
 0x185   :  { %v295_v18 = vpop.f32.mrf.mxu1 }
 0x186   :  { %v296_v19 = vadd.f32 %v828_v50, %v295_v18 }
 0x188   :  { %v323_v21 = vmax.f32 %v296_v19, 0.0 }
 0x18a   :  { %395 = vmatmul.f32.gmra.mxu2 %v323_v21 }
 0x18d   :  { %v298_v25 = vpop.f32.mrf.mxu1 }
 0x18e   :  { %v299_v26 = vadd.f32 %v828_v50, %v298_v25 }
 0x190   :  { %v324_v28 = vmax.f32 %v299_v26, 0.0 }
 0x192   :  { %398 = vmatmul.f32.gmra.mxu2 %v324_v28 }
 0x195   :  { %v301_v33 = vpop.f32.mrf.mxu1 }
 0x196   :  { %v302_v34 = vadd.f32 %v828_v50, %v301_v33 }
 0x198   :  { %v325_v36 = vmax.f32 %v302_v34, 0.0 }
 0x19a   :  { %401 = vmatmul.f32.gmra.mxu2 %v325_v36 }
 0x19d   :  { %v304_v39 = vpop.f32.mrf.mxu1 }
 0x19e   :  { %v305_v40 = vadd.f32 %v828_v50, %v304_v39 }
 0x1a0   :  { %v326_v42 = vmax.f32 %v305_v40, 0.0 }
 0x1a2   :  { %404 = vmatmul.f32.gmra.mxu2 %v326_v42 }
 0x1a5   :  { %v307_v44 = vpop.f32.mrf.mxu1 }
 0x1a6   :  { %v308_v45 = vadd.f32 %v828_v50, %v307_v44 }
 0x1a8   :  { %v327_v46 = vmax.f32 %v308_v45, 0.0 }
 0x1aa   :  { %407 = vmatmul.f32.gmra.mxu2 %v327_v46 }
 0x1ad   :  { %v310_v47 = vpop.f32.mrf.mxu1 }
 0x1ae   :  { %v311_v49 = vadd.f32 %v828_v50, %v310_v47 }
 0x1b0   :  { %v328_v51 = vmax.f32 %v311_v49, 0.0 }
 0x1b2   :  { %410 = vmatmul.f32.gmra.mxu2 %v328_v51 }
 0x1bd   :  { %v366_v53 = vpop.f32.mrf.mxu2 }
 0x1be   :  { %v367_v54 = vadd.f32 %v562_v52, %v366_v53 }
 0x1c0   :  { %v414_v55 = vmax.f32 %v367_v54, 0.0 }
 0x1c2   :  { %466 = vmatmul.f32.vlgmr.msra.gmra.mxu3 %v414_v55 }
 0x1c5   :  { %v369_v56 = vpop.f32.mrf.mxu2 }
 0x1c6   :  { %v370_v57 = vadd.f32 %v562_v52, %v369_v56 }
 0x1c8   :  { %v415_v48 = vmax.f32 %v370_v57, 0.0 }
 0x1ca   :  { %469 = vmatmul.f32.gmra.mxu3 %v415_v48 }
 0x1cd   :  { %v372_v58 = vpop.f32.mrf.mxu2 }
 0x1ce   :  { %v373_v59 = vadd.f32 %v562_v52, %v372_v58 }
 0x1d0   :  { %v416_v60 = vmax.f32 %v373_v59, 0.0 }
 0x1d2   :  { %472 = vmatmul.f32.gmra.mxu3 %v416_v60 }
 0x1d5   :  { %v375_v61 = vpop.f32.mrf.mxu2 }
 0x1d6   :  { %v376_v50 = vadd.f32 %v562_v52, %v375_v61 }
 0x1d8   :  { %v417_v62 = vmax.f32 %v376_v50, 0.0 }
 0x1da   :  { %475 = vmatmul.f32.gmra.mxu3 %v417_v62 }
 0x1dd   :  { %v378_v63 = vpop.f32.mrf.mxu2 }
 0x1de   :  { %v379_v0 = vadd.f32 %v562_v52, %v378_v63 }
 0x1e0   :  { %v418_v1 = vmax.f32 %v379_v0, 0.0 }
 0x1e2   :  { %478 = vmatmul.f32.gmra.mxu3 %v418_v1 }
 0x1e5   :  { %v381_v2 = vpop.f32.mrf.mxu2 }
 0x1e6   :  { %v382_v3 = vadd.f32 %v562_v52, %v381_v2 }
 0x1e8   :  { %v419_v4 = vmax.f32 %v382_v3, 0.0 }
 0x1ea   :  { %481 = vmatmul.f32.gmra.mxu3 %v419_v4 }
 0x1ed   :  { %v384_v5 = vpop.f32.mrf.mxu2 }
 0x1ee   :  { %v385_v6 = vadd.f32 %v562_v52, %v384_v5 }
 0x1f0   :  { %v420_v7 = vmax.f32 %v385_v6, 0.0 }
 0x1f2   :  { %484 = vmatmul.f32.gmra.mxu3 %v420_v7 }
 0x1f5   :  { %v387_v8 = vpop.f32.mrf.mxu2 }
 0x1f6   :  { %v388_v9 = vadd.f32 %v562_v52, %v387_v8 }
 0x1f8   :  { %v421_v10 = vmax.f32 %v388_v9, 0.0 }
 0x1fa   :  { %487 = vmatmul.f32.gmra.mxu3 %v421_v10 }
 0x1fd   :  { %v390_v11 = vpop.f32.mrf.mxu2 }
 0x1fe   :  { %v391_v12 = vadd.f32 %v562_v52, %v390_v11 }
 0x200   :  { %v422_v13 = vmax.f32 %v391_v12, 0.0 }
 0x202   :  { %490 = vmatmul.f32.gmra.mxu3 %v422_v13 }
 0x205   :  { %v393_v14 = vpop.f32.mrf.mxu2 }
 0x206   :  { %v394_v15 = vadd.f32 %v562_v52, %v393_v14 }
 0x208   :  { %v423_v16 = vmax.f32 %v394_v15, 0.0 }
 0x20a   :  { %493 = vmatmul.f32.gmra.mxu3 %v423_v16 }
 0x20d   :  { %v396_v17 = vpop.f32.mrf.mxu2 }
 0x20e   :  { %v397_v18 = vadd.f32 %v562_v52, %v396_v17 }
 0x210   :  { %v424_v19 = vmax.f32 %v397_v18, 0.0 }
 0x212   :  { %496 = vmatmul.f32.gmra.mxu3 %v424_v19 }
 0x215   :  { %v399_v20 = vpop.f32.mrf.mxu2 }
 0x216   :  { %v400_v21 = vadd.f32 %v562_v52, %v399_v20 }
 0x218   :  { %v425_v22 = vmax.f32 %v400_v21, 0.0 }
 0x21a   :  { %499 = vmatmul.f32.gmra.mxu3 %v425_v22 }
 0x21d   :  { %v402_v23 = vpop.f32.mrf.mxu2 }
 0x21e   :  { %v403_v24 = vadd.f32 %v562_v52, %v402_v23 }
 0x220   :  { %v426_v25 = vmax.f32 %v403_v24, 0.0 }
 0x222   :  { %502 = vmatmul.f32.gmra.mxu3 %v426_v25 }
 0x225   :  { %v405_v26 = vpop.f32.mrf.mxu2 }
 0x226   :  { %v406_v27 = vadd.f32 %v562_v52, %v405_v26 }
 0x228   :  { %v427_v28 = vmax.f32 %v406_v27, 0.0 }
 0x22a   :  { %505 = vmatmul.f32.gmra.mxu3 %v427_v28 }
 0x22d   :  { %v408_v29 = vpop.f32.mrf.mxu2 }
 0x22e   :  { %v409_v30 = vadd.f32 %v562_v52, %v408_v29 }
 0x230   :  { %v428_v31 = vmax.f32 %v409_v30, 0.0 }
 0x232   :  { %508 = vmatmul.f32.gmra.mxu3 %v428_v31 }
 0x235   :  { %v411_v32 = vpop.f32.mrf.mxu2 }
 0x236   :  { %v412_v33 = vadd.f32 %v562_v52, %v411_v32 }
 0x238   :  { %v429_v34 = vmax.f32 %v412_v33, 0.0 }
 0x23a   :  { %511 = vmatmul.f32.gmra.mxu3 %v429_v34 }
 0x245   :  { %v467_v36 = vpop.f32.mrf.mxu3 }
 0x246   :  { %v468_v37 = vadd.f32 %v563_v35, %v467_v36 }
 0x248   :  { %515 = vst [vmem:[#allocation11] sm:$0xff] %v468_v37 }
 0x24d   :  { %v470_v38 = vpop.f32.mrf.mxu3 }
 0x24e   :  { %v471_v39 = vadd.f32 %v563_v35, %v470_v38 }
 0x250   :  { %516 = vst [vmem:[#allocation11 + $0x8] sm:$0xff] %v471_v39 }
 0x255   :  { %v473_v40 = vpop.f32.mrf.mxu3 }
 0x256   :  { %v474_v41 = vadd.f32 %v563_v35, %v473_v40 }
 0x258   :  { %517 = vst [vmem:[#allocation11 + $0x10] sm:$0xff] %v474_v41 }
 0x25d   :  { %v476_v42 = vpop.f32.mrf.mxu3 }
 0x25e   :  { %v477_v43 = vadd.f32 %v563_v35, %v476_v42 }
 0x260   :  { %518 = vst [vmem:[#allocation11 + $0x18] sm:$0xff] %v477_v43 }
 0x265   :  { %v479_v44 = vpop.f32.mrf.mxu3 }
 0x266   :  { %v480_v45 = vadd.f32 %v563_v35, %v479_v44 }
 0x268   :  { %519 = vst [vmem:[#allocation11 + $0x20] sm:$0xff] %v480_v45 }
 0x26d   :  { %v482_v46 = vpop.f32.mrf.mxu3 }
 0x26e   :  { %v483_v47 = vadd.f32 %v563_v35, %v482_v46 }
 0x270   :  { %520 = vst [vmem:[#allocation11 + $0x28] sm:$0xff] %v483_v47 }
 0x275   :  { %v485_v49 = vpop.f32.mrf.mxu3 }
 0x276   :  { %v486_v51 = vadd.f32 %v563_v35, %v485_v49 }
 0x278   :  { %521 = vst [vmem:[#allocation11 + $0x30] sm:$0xff] %v486_v51 }
 0x27d   :  { %v488_v52 = vpop.f32.mrf.mxu3 }
 0x27e   :  { %v489_v53 = vadd.f32 %v563_v35, %v488_v52 }
 0x280   :  { %522 = vst [vmem:[#allocation11 + $0x38] sm:$0xff] %v489_v53 }
 0x285   :  { %v491_v54 = vpop.f32.mrf.mxu3 }
 0x286   :  { %v492_v55 = vadd.f32 %v563_v35, %v491_v54 }
 0x288   :  { %523 = vst [vmem:[#allocation11 + $0x40] sm:$0xff] %v492_v55 }
 0x28d   :  { %v494_v56 = vpop.f32.mrf.mxu3 }
 0x28e   :  { %v495_v57 = vadd.f32 %v563_v35, %v494_v56 }
 0x290   :  { %524 = vst [vmem:[#allocation11 + $0x48] sm:$0xff] %v495_v57 }
 0x295   :  { %v497_v48 = vpop.f32.mrf.mxu3 }
 0x296   :  { %v498_v58 = vadd.f32 %v563_v35, %v497_v48 }
 0x298   :  { %525 = vst [vmem:[#allocation11 + $0x50] sm:$0xff] %v498_v58 }
 0x29d   :  { %v500_v59 = vpop.f32.mrf.mxu3 }
 0x29e   :  { %v501_v60 = vadd.f32 %v563_v35, %v500_v59 }
 0x2a0   :  { %526 = vst [vmem:[#allocation11 + $0x58] sm:$0xff] %v501_v60 }
 0x2a5   :  { %v503_v61 = vpop.f32.mrf.mxu3 }
 0x2a6   :  { %v504_v50 = vadd.f32 %v563_v35, %v503_v61 }
 0x2a8   :  { %527 = vst [vmem:[#allocation11 + $0x60] sm:$0xff] %v504_v50 }
 0x2ad   :  { %v506_v62 = vpop.f32.mrf.mxu3 }
 0x2ae   :  { %v507_v63 = vadd.f32 %v563_v35, %v506_v62 }
 0x2b0   :  { %528 = vst [vmem:[#allocation11 + $0x68] sm:$0xff] %v507_v63 }
 0x2b5   :  { %v509_v0 = vpop.f32.mrf.mxu3 }
 0x2b6   :  { %v510_v1 = vadd.f32 %v563_v35, %v509_v0 }
 0x2b8   :  { %529 = vst [vmem:[#allocation11 + $0x70] sm:$0xff] %v510_v1 }
 0x2bd   :  { %v512_v2 = vpop.f32.mrf.mxu3 }
 0x2be   :  { %v513_v3 = vadd.f32 %v563_v35, %v512_v2 }
 0x2c0   :  { %530 = vst [vmem:[#allocation11 + $0x78] sm:$0xff] %v513_v3 }
 0x2c1   :  { %543 = dma.vmem_to_hbm [thread:$0]  %s536_s15, 2048, %s538_s20, [#allocation4], %s717_s17, %s717_s17, %s718_s18  }
 0x2c2   :  { %714 = dma.done.wait [#allocation4], 2048  }
 0x2c3   :  { %715 = vsyncadd [#allocation4], 4294965248 }
 0x2c4   :  { %548 = vsyncpa [#allocation3], 1 }
 0x2c5   :  { %549 = vsyncpa [#allocation6], 1 }
 0x2c6   :  { %550 = vsyncpa [#allocation9], 1 }
 0x2c7   :  { %551 = vsyncpa [#allocation4], 1 }

</bundles_post_ra>
